<compile_context>
chip_gen: v6e
topology: v6e:2x2x1
jax: 0.10.0
libtpu: 0.0.40
codegen_flags: <defaults>
</compile_context>

<pallas_src>
import functools
import math

import jax
import jax.numpy as jnp
import numpy as np
from jax import lax
from jax.experimental import pallas as pl
from jax.experimental.pallas import tpu as pltpu

_LANE = 128                      # TPU lane width
_TARGET_BLOCK_BYTES = 1 << 20    # ~1 MiB f32 per block; ~4x after in+out double-buffering,
                                 # comfortably under default scoped VMEM on v5e/v6e/v7x.


def _pick_tile(n_groups, group_size, block_bytes):
    """Lane-dim tile (multiple of 128) so one (n_groups, tile) f32 block is ~ block_bytes."""
    per_group = (block_bytes // 4) // max(n_groups, 1)
    tile = max(_LANE, (per_group // _LANE) * _LANE)
    full = pl.cdiv(group_size, _LANE) * _LANE
    return int(min(tile, full))


# ----------------------------------- kernels -----------------------------------

def _group_max_kernel(x_ref, gmax_ref, *, tile, group_size):
    """Pass 1 (top_db only): running per-group max of raw x over column tiles."""
    c = pl.program_id(0)

    @pl.when(c == 0)
    def _():
        gmax_ref[...] = jnp.full_like(gmax_ref[...], -jnp.inf)

    x = x_ref[...]                                    # (n_groups, tile)
    if group_size % tile != 0:                        # static check: mask the ragged lane tail
        col = c * tile + lax.broadcasted_iota(jnp.int32, x.shape, 1)
        x = jnp.where(col < group_size, x, -jnp.inf)
    gmax_ref[...] = jnp.maximum(gmax_ref[...], jnp.max(x, axis=1, keepdims=True))


def _amp_to_db_kernel(x_ref, o_ref, *, log_scale, db_offset, amin):
    """Elementwise dB conversion (no floor)."""
    o_ref[...] = jnp.log(jnp.maximum(x_ref[...], amin)) * log_scale - db_offset


def _amp_to_db_floor_kernel(x_ref, floor_ref, o_ref, *, log_scale, db_offset, amin):
    """Elementwise dB conversion + per-group floor clamp ((n_groups, 1) broadcast)."""
    x_db = jnp.log(jnp.maximum(x_ref[...], amin)) * log_scale - db_offset
    o_ref[...] = jnp.maximum(x_db, floor_ref[...])


# ----------------------------------- wrapper -----------------------------------

def quantizable_amplitude_to_db(x, *, stype="power", top_db=None, amin=1e-10,
                                ref_value=1.0, block_bytes=_TARGET_BLOCK_BYTES):
    """JAX/Pallas equivalent of QuantizableAmplitudeToDB.forward."""
    if top_db is not None and top_db < 0:
        raise ValueError("top_db must be positive value")
    multiplier = 10.0 if stype == "power" else 20.0
    db_multiplier = math.log10(max(amin, ref_value))
    db_offset = multiplier * db_multiplier
    log_scale = multiplier / math.log(10.0)   # fold log10 base conversion into one multiply

    orig_shape, orig_dtype = x.shape, x.dtype
    xf = x if x.dtype == jnp.float32 else x.astype(jnp.float32)
    # TODO(synk): bf16 inputs are upcast to f32 here; a native bf16 path would use (16,128) packing.

    total = math.prod(orig_shape)
    if top_db is None:
        n_groups, group_size = 1, total
    else:
        if x.ndim < 3:
            raise ValueError("top_db path requires at least 3 dims")
        n_groups = math.prod(orig_shape[:-3]) if x.ndim > 3 else 1
        group_size = math.prod(orig_shape[-3:])

    x2 = xf.reshape(n_groups, group_size)     # row-major coalescing reshape: no copy
    tile = _pick_tile(n_groups, group_size, block_bytes)
    num_tiles = int(pl.cdiv(group_size, tile))
    n_elems = n_groups * group_size
    # TODO(synk): if n_groups is huge (>~16K) also tile the group (row) axis to bound block size.

    if top_db is not None:
        # Pass 1: per-group max of raw x (log10 is monotone, so max(x_db) derives from max(x)).
        gmax = pl.pallas_call(
            functools.partial(_group_max_kernel, tile=tile, group_size=group_size),
            out_shape=jax.ShapeDtypeStruct((n_groups, 1), jnp.float32),
            grid=(num_tiles,),
            in_specs=[pl.BlockSpec((n_groups, tile), lambda c: (0, c))],
            out_specs=pl.BlockSpec((n_groups, 1), lambda c: (0, 0)),
            compiler_params=pltpu.CompilerParams(dimension_semantics=("arbitrary",)),
            cost_estimate=pl.CostEstimate(flops=n_elems, transcendentals=0,
                                          bytes_accessed=4 * n_elems),
        )(x2)
        # n_groups scalars: compute the per-group dB floor in plain JAX (negligible).
        floor = log_scale * jnp.log(jnp.maximum(gmax, amin)) - db_offset - top_db

        out2 = pl.pallas_call(
            functools.partial(_amp_to_db_floor_kernel, log_scale=log_scale,
                              db_offset=db_offset, amin=amin),
            out_shape=jax.ShapeDtypeStruct((n_groups, group_size), jnp.float32),
            grid=(num_tiles,),
            in_specs=[pl.BlockSpec((n_groups, tile), lambda c: (0, c)),
                      pl.BlockSpec((n_groups, 1), lambda c: (0, 0))],
            out_specs=pl.BlockSpec((n_groups, tile), lambda c: (0, c)),
            compiler_params=pltpu.CompilerParams(dimension_semantics=("parallel",)),
            cost_estimate=pl.CostEstimate(flops=3 * n_elems, transcendentals=n_elems,
                                          bytes_accessed=8 * n_elems),
        )(x2, floor)
    else:
        out2 = pl.pallas_call(
            functools.partial(_amp_to_db_kernel, log_scale=log_scale,
                              db_offset=db_offset, amin=amin),
            out_shape=jax.ShapeDtypeStruct((n_groups, group_size), jnp.float32),
            grid=(num_tiles,),
            in_specs=[pl.BlockSpec((n_groups, tile), lambda c: (0, c))],
            out_specs=pl.BlockSpec((n_groups, tile), lambda c: (0, c)),
            compiler_params=pltpu.CompilerParams(dimension_semantics=("parallel",)),
            cost_estimate=pl.CostEstimate(flops=2 * n_elems, transcendentals=n_elems,
                                          bytes_accessed=8 * n_elems),
        )(x2)

    out = out2.reshape(orig_shape)
    return out if orig_dtype == jnp.float32 else out.astype(orig_dtype)


# -------------------------------- pure-JAX reference --------------------------------

def _reference(x, *, stype="power", top_db=None, amin=1e-10, ref_value=1.0):
    multiplier = 10.0 if stype == "power" else 20.0
    db_multiplier = math.log10(max(amin, ref_value))
    x_db = multiplier * jnp.log10(jnp.maximum(x, amin)) - multiplier * db_multiplier
    if top_db is not None:
        shape = x_db.shape
        xr = x_db.reshape((-1,) + shape[-3:])
        mx = xr.max(axis=(-3, -2, -1), keepdims=True)
        xr = jnp.maximum(xr, mx - top_db)
        x_db = xr.reshape(shape)
    return x_db


# ------------------------------------- main -----------------------------------------

if __name__ == "__main__":
    # spectrogram-like input: (batch, channels, freq, time)
    B, C, Fq, T = 2, 4, 16, 16
    key = jax.random.PRNGKey(0)
    x = jax.random.normal(key, (B, C, Fq, T), dtype=jnp.float32) ** 2  # power-scale values

    # top_db=None path (default constructor): pure elementwise streaming
    y0 = jax.block_until_ready(quantizable_amplitude_to_db(x, stype="power", top_db=None))
    np.testing.assert_allclose(np.asarray(y0), np.asarray(_reference(x, stype="power")),
                               rtol=1e-5, atol=5e-4)

    # top_db=80 path (per-spectrogram max reduction + floor clamp)
    y1 = jax.block_until_ready(quantizable_amplitude_to_db(x, stype="power", top_db=80.0))
    np.testing.assert_allclose(np.asarray(y1),
                               np.asarray(_reference(x, stype="power", top_db=80.0)),
                               rtol=1e-5, atol=5e-4)

    # magnitude scale, sanity
    y2 = jax.block_until_ready(quantizable_amplitude_to_db(x, stype="magnitude", top_db=80.0))
    np.testing.assert_allclose(np.asarray(y2),
                               np.asarray(_reference(x, stype="magnitude", top_db=80.0)),
                               rtol=1e-5, atol=5e-4)

    # multi-tile grid exercise (tiny block budget forces 4 column tiles per group)
    y3 = jax.block_until_ready(
        quantizable_amplitude_to_db(x, stype="power", top_db=80.0, block_bytes=2048))
    np.testing.assert_allclose(np.asarray(y3),
                               np.asarray(_reference(x, stype="power", top_db=80.0)),
                               rtol=1e-5, atol=5e-4)

    # ragged tail (group_size = 3*5*7 = 105, not a multiple of 128) -> in-kernel masking path
    xr = jax.random.uniform(jax.random.PRNGKey(1), (2, 3, 5, 7), dtype=jnp.float32)
    y4 = jax.block_until_ready(quantizable_amplitude_to_db(xr, stype="power", top_db=80.0))
    np.testing.assert_allclose(np.asarray(y4),
                               np.asarray(_reference(xr, stype="power", top_db=80.0)),
                               rtol=1e-5, atol=5e-4)
    y5 = jax.block_until_ready(quantizable_amplitude_to_db(xr, stype="power", top_db=None))
    np.testing.assert_allclose(np.asarray(y5), np.asarray(_reference(xr, stype="power")),
                               rtol=1e-5, atol=5e-4)

    print("KERNEL_OK")
</pallas_src>

<mosaic_0001>
module attributes {stable_mosaic.version = 11 : i64} {
  func.func @_amp_to_db_kernel(%arg0: i32, %arg1: memref<1x2048xf32, #tpu.memory_space<vmem>>, %arg2: memref<1x2048xf32, #tpu.memory_space<vmem>>) attributes {dimension_semantics = [#tpu.dimension_semantics<parallel>], iteration_bounds = array<i64: 1>, scalar_prefetch = 0 : i64, scratch_operands = 0 : i64, tpu.core_type = #tpu.core_type<tc>, window_params = [{transform_indices = @transform_0, window_bounds = array<i64: 1, 2048>}, {transform_indices = @transform_1, window_bounds = array<i64: 1, 2048>}]} {
    %c0 = arith.constant 0 : index
    %c0_0 = arith.constant 0 : index
    %0 = vector.load %arg1[%c0, %c0_0] : memref<1x2048xf32, #tpu.memory_space<vmem>>, vector<1x2048xf32>
    %cst = arith.constant 1.000000e-10 : f32
    %1 = vector.broadcast %cst : f32 to vector<1x2048xf32>
    %2 = arith.maximumf %0, %1 : vector<1x2048xf32>
    %3 = math.log %2 : vector<1x2048xf32>
    %cst_1 = arith.constant 4.34294462 : f32
    %4 = vector.broadcast %cst_1 : f32 to vector<1x2048xf32>
    %5 = arith.mulf %3, %4 : vector<1x2048xf32>
    %cst_2 = arith.constant 0.000000e+00 : f32
    %6 = vector.broadcast %cst_2 : f32 to vector<1x2048xf32>
    %7 = arith.subf %5, %6 : vector<1x2048xf32>
    %c0_3 = arith.constant 0 : index
    %c0_4 = arith.constant 0 : index
    %8 = vector.load %arg2[%c0_3, %c0_4] : memref<1x2048xf32, #tpu.memory_space<vmem>>, vector<1x2048xf32>
    tpu.vector_store %arg2[%c0_3, %c0_4], %7 {strides = array<i32>} : memref<1x2048xf32, #tpu.memory_space<vmem>>, vector<1x2048xf32>,
    return
  }
  func.func @transform_0(%arg0: i32) -> (i32, i32) {
    %c0_i32 = arith.constant 0 : i32
    %c0_i32_0 = arith.constant 0 : i32
    return %c0_i32, %arg0 : i32, i32
  }
  func.func @transform_1(%arg0: i32) -> (i32, i32) {
    %c0_i32 = arith.constant 0 : i32
    %c0_i32_0 = arith.constant 0 : i32
    return %c0_i32, %arg0 : i32, i32
  }
}

</mosaic_0001>

<bundles_post_ra>
// kernel: tpu_custom_call.1
= control target key start
LH: loop header
LB: loop body
LE: loop exit
PB: predicated region body
PF: predicated region fallthrough
CT: control target
= control target key end

     0   :  { %6 = vsyncpa [#allocation3], 0  ;;  %s116_s0 = inlined_call_operand.hbm [shape: f32[1,2048], index: 0, kind: input, shape index: {}]   ;;  %s117_s1 = inlined_call_operand.hbm [shape: f32[1,2048], index: 1, kind: output, shape index: {}]  }
   0x1   :  { %7 = vsyncpa [#allocation4], 0  ;;  %s98_s6 = smov [#allocation2]  }
   0x2   :  { %s14_s7 = sshll.u32 %s98_s6, 4  ;;  %s15_s7 = int_to_ptr.vmem [resolvable:$true] %s14_s7 }
   0x3   :  { %s62_s8 = scalar_lea.vmem %s15_s7, 256  ;;  %p67_p1 = scmp.lt.s32.totalorder %s15_s7, %s15_s7 }
   0x4   :  { %p63_p0 = scmp.ne.s32.totalorder %s15_s7, %s62_s8  ;;  %p68_p2 = scmp.lt.s32.totalorder %s62_s8, %s62_s8 }
   0x6   :  { %p69_p3 = por %p68_p2, %p67_p1 }
   0x8   :  { %p70_p4 = pnand %p69_p3, %p63_p0 }
   0xa   :  { %73 = shalt.err (!%p70_p4)
}
   0xb   :  { %17 = dma.hbm_to_vmem [thread:$0]  %s116_s0, 256, %s15_s7, [#allocation3]  }
   0xc   :  { %94 = dma.done.wait [#allocation3], 256  }
   0xd   :  { %95 = vsyncadd [#allocation3], 4294967040  ;;  %v21_v0 = vld [vmem:[#allocation2] sm:$0xff]  ;;  %v22_v1 = vld [vmem:[#allocation2 + $0x8] sm:$0xff]  ;;  %s99_s11 = smov [#allocation5]  }
   0xe   :  { %v23_v2 = vmax.f32 %v21_v0, 1e-10  ;;  %v24_v3 = vmax.f32 %v22_v1, 1e-10  ;;  %s39_s12 = sshll.u32 %s99_s11, 4  ;;  %s40_s12 = int_to_ptr.vmem [resolvable:$true] %s39_s12 }
   0xf   :  { %s74_s0 = scalar_lea.vmem %s40_s12, 256  ;;  %p79_p6 = scmp.lt.s32.totalorder %s40_s12, %s40_s12 }
  0x10   :  { %50 = vlog2.f32 %v23_v2  ;;  %p75_p5 = scmp.ne.s32.totalorder %s40_s12, %s74_s0  ;;  %p80_p7 = scmp.lt.s32.totalorder %s74_s0, %s74_s0 }
  0x11   :  { %52 = vlog2.f32 %v24_v3 }
  0x12   :  { %p81_p8 = por %p80_p7, %p79_p6 }
  0x14   :  { %p82_p9 = pnand %p81_p8, %p75_p5 }
  0x1d   :  { %v51_v4 = vpop.eup %50 }
  0x1e   :  { %v53_v5 = vpop.eup %52  ;;  %v26_v6 = vmul.f32 0.6931472, %v51_v4 }
  0x1f   :  { %v28_v7 = vmul.f32 0.6931472, %v53_v5 }
  0x20   :  { %v29_v8 = vmul.f32 4.3429446, %v26_v6 }
  0x21   :  { %v30_v9 = vmul.f32 4.3429446, %v28_v7 }
  0x22   :  { %31 = vst [vmem:[#allocation5] sm:$0xff] %v29_v8 }
  0x23   :  { %32 = vst [vmem:[#allocation5 + $0x8] sm:$0xff] %v30_v9 }
  0x24   :  { %85 = shalt.err (!%p82_p9)
}
  0x25   :  { %42 = dma.vmem_to_hbm [thread:$0]  %s40_s12, 256, %s117_s1, [#allocation4]  }
  0x26   :  { %96 = dma.done.wait [#allocation4], 256  }
  0x27   :  { %97 = vsyncadd [#allocation4], 4294967040 }
  0x28   :  { %46 = vsyncpa [#allocation3], 1 }
  0x29   :  { %47 = vsyncpa [#allocation4], 1 }

</bundles_post_ra>
